<compile_context>
chip_gen: v6e
topology: v6e:2x2x1
jax: 0.10.0
libtpu: 0.0.40
codegen_flags: <defaults>
</compile_context>

<pallas_src>
import functools

import jax
import jax.numpy as jnp
from jax.experimental import pallas as pl
from jax.experimental.pallas import tpu as pltpu


def _tself_attention_kernel(q_ref, k_ref, v_ref, wqkv_ref, wo_ref, b_ref, out_ref,
                            *, heads, head_dim, embed_size, block_n):
    D = head_dim
    T = q_ref.shape[2]
    Tk = k_ref.shape[2]
    Z = heads * block_n
    epad = wo_ref.shape[2]

    # (heads, block_n, T, D) -> (Z*T, D): leading-dim merge only (lane dim untouched).
    qf = q_ref[...].reshape(Z * T, D)
    kf = k_ref[...].reshape(Z * Tk, D)
    vf = v_ref[...].reshape(Z * Tk, D)

    # Per-head linear projections (one shared (D, D) weight per stream, no bias).
    Qb = jnp.dot(qf, wqkv_ref[0],
                 preferred_element_type=jnp.float32).astype(jnp.bfloat16).reshape(Z, T, D)
    Kb = jnp.dot(kf, wqkv_ref[1],
                 preferred_element_type=jnp.float32).astype(jnp.bfloat16).reshape(Z, Tk, D)
    Vb = jnp.dot(vf, wqkv_ref[2],
                 preferred_element_type=jnp.float32).astype(jnp.bfloat16).reshape(Z, Tk, D)

    # energy[z, q, k] = sum_d Q[z,q,d] K[z,k,d]  (batched dot_general, no explicit .T).
    energy = jnp.einsum('zqd,zkd->zqk', Qb, Kb, preferred_element_type=jnp.float32)
    scale = 1.0 / (float(embed_size) ** 0.5)
    energy = jnp.clip(energy * scale, -5.0, 5.0)

    # softmax over keys in f32; reciprocal on the EUP slot (free w.r.t. VALU/MXU).
    m = jnp.max(energy, axis=-1, keepdims=True)
    p = jnp.exp(energy - m)
    denom = jnp.sum(p, axis=-1, keepdims=True)
    att = (p * pl.reciprocal(denom, approx=True)).astype(jnp.bfloat16)

    # context[z, q, d] = sum_k att[z,q,k] V[z,k,d]
    ctx = jnp.einsum('zqk,zkd->zqd', att, Vb,
                     preferred_element_type=jnp.float32).astype(jnp.bfloat16)   # (Z, T, D)

    # fc_out folded per head: out[n,t,e] = sum_h sum_d ctx[h,n,t,d] * WoT[h*D+d, e] + b[e].
    # Head-major layout -> contiguous leading-dim slices; `heads` small 2D matmuls,
    # f32 accumulate, no batch-tiled weight.
    y = jnp.zeros((block_n * T, epad), jnp.float32)
    for h in range(heads):
        ctx_h = ctx[h * block_n:(h + 1) * block_n].reshape(block_n * T, D)
        y = y + jnp.dot(ctx_h, wo_ref[h], preferred_element_type=jnp.float32)

    out_ref[...] = y.reshape(block_n, T, epad) + b_ref[...]   # lane-dense f32 store


def init_params(key, embed_size, heads):
    head_dim = embed_size // heads
    ks = jax.random.split(key, 5)
    s = 0.02
    return {
        # nn.Linear weights are (out_features, in_features)
        "w_values":  s * jax.random.normal(ks[0], (head_dim, head_dim), jnp.float32),
        "w_keys":    s * jax.random.normal(ks[1], (head_dim, head_dim), jnp.float32),
        "w_queries": s * jax.random.normal(ks[2], (head_dim, head_dim), jnp.float32),
        "w_fc_out":  s * jax.random.normal(ks[3], (embed_size, embed_size), jnp.float32),
        "b_fc_out":  s * jax.random.normal(ks[4], (embed_size,), jnp.float32),
    }


def tself_attention_forward(values, keys, query, params, *, heads):
    N, T, E = query.shape
    Nk, Tk, Ek = keys.shape
    assert Nk == N and Ek == E and E % heads == 0
    D = E // heads
    Epad = max(128, ((E + 127) // 128) * 128)   # lane-dense output width

    # ---- batch blocking: ~256 flattened rows per grid step, but keep >= 2 parallel
    # steps when N >= 2 so both TensorCores stay busy on v7x / megacore. ----
    block_n = max(1, min(N, 256 // max(T, 1)))
    if N >= 2:
        block_n = min(block_n, pl.cdiv(N, 2))
    num_steps = pl.cdiv(N, block_n)
    n_pad = num_steps * block_n

    # ---- layout plumbing (runs once inside the surrounding jit) ----
    def to_heads(x, n, t):
        x = x.reshape(n, t, heads, D).transpose(2, 0, 1, 3)          # (heads, N, t, D)
        if n_pad != n:
            x = jnp.pad(x, ((0, 0), (0, n_pad - n), (0, 0), (0, 0)))
        return x.astype(jnp.bfloat16)

    qh = to_heads(query, N, T)
    kh = to_heads(keys, Nk, Tk)
    vh = to_heads(values, Nk, Tk)

    # Stacked per-head projection weights, transposed to (in, out) -> one small ref.
    wqkv = jnp.stack([params["w_queries"].T,
                      params["w_keys"].T,
                      params["w_values"].T]).astype(jnp.bfloat16)    # (3, D, D)

    # fc_out: W (E_out, E_in) -> W^T (E_in, E_out) -> (heads, D, E) -> pad lanes to Epad.
    wo_r = params["w_fc_out"].T.reshape(heads, D, E)
    wo_r = jnp.pad(wo_r, ((0, 0), (0, 0), (0, Epad - E))).astype(jnp.bfloat16)  # (heads, D, Epad)

    bias = jnp.pad(params["b_fc_out"], (0, Epad - E)).reshape(1, 1, Epad).astype(jnp.float32)

    kernel = functools.partial(_tself_attention_kernel, heads=heads, head_dim=D,
                               embed_size=E, block_n=block_n)

    out_padded = pl.pallas_call(
        kernel,
        out_shape=jax.ShapeDtypeStruct((n_pad, T, Epad), jnp.float32),
        grid=(num_steps,),
        in_specs=[
            pl.BlockSpec((heads, block_n, T, D), lambda n: (0, n, 0, 0)),    # query
            pl.BlockSpec((heads, block_n, Tk, D), lambda n: (0, n, 0, 0)),   # keys
            pl.BlockSpec((heads, block_n, Tk, D), lambda n: (0, n, 0, 0)),   # values
            pl.BlockSpec((3, D, D), lambda n: (0, 0, 0)),                    # Wq/Wk/Wv (stacked)
            pl.BlockSpec((heads, D, Epad), lambda n: (0, 0, 0)),             # fc_out W^T (padded)
            pl.BlockSpec((1, 1, Epad), lambda n: (0, 0, 0)),                 # fc_out bias (padded)
        ],
        out_specs=pl.BlockSpec((block_n, T, Epad), lambda n: (n, 0, 0)),
        compiler_params=pltpu.CompilerParams(
            dimension_semantics=("parallel",)),
    )(qh, kh, vh, wqkv, wo_r, bias)

    return out_padded[:N, :, :E]


def tself_attention_ref(values, keys, query, params, heads):
    """Pure-JAX f32 reference mirroring the PyTorch module exactly."""
    N, T, E = query.shape
    Nk, Tk, _ = keys.shape
    D = E // heads
    v = values.reshape(Nk, Tk, heads, D) @ params["w_values"].T
    k = keys.reshape(Nk, Tk, heads, D) @ params["w_keys"].T
    q = query.reshape(N, T, heads, D) @ params["w_queries"].T
    energy = jnp.einsum('nqhd,nkhd->nqkh', q, k)
    att = jax.nn.softmax(jnp.clip(energy / (E ** 0.5), -5.0, 5.0), axis=2)
    out = jnp.einsum('nqkh,nkhd->nqhd', att, v).reshape(N, T, E)
    return out @ params["w_fc_out"].T + params["b_fc_out"]


if __name__ == "__main__":
    # Small shapes consistent with the module: (N, T, embed_size)
    N, T = 2, 8
    embed_size, heads = 32, 4

    root = jax.random.PRNGKey(0)
    k_v, k_k, k_q, k_p = jax.random.split(root, 4)
    values = jax.random.normal(k_v, (N, T, embed_size), jnp.float32)
    keys = jax.random.normal(k_k, (N, T, embed_size), jnp.float32)
    query = jax.random.normal(k_q, (N, T, embed_size), jnp.float32)

    params = init_params(k_p, embed_size, heads)

    fwd = jax.jit(functools.partial(tself_attention_forward, heads=heads))
    out = fwd(values, keys, query, params)
    jax.block_until_ready(out)
    assert out.shape == (N, T, embed_size)

    # Correctness vs. pure-JAX f32 reference (loose tolerance: bf16 operands + approx recip).
    ref = tself_attention_ref(values, keys, query, params, heads)
    err = float(jnp.max(jnp.abs(out - ref)))
    assert err < 5e-3, f"max abs error too large: {err}"
    print("KERNEL_OK")
</pallas_src>

<mosaic_0001>
module attributes {stable_mosaic.version = 11 : i64} {
  func.func @_tself_attention_kernel(%arg0: i32, %arg1: memref<4x1x8x8xbf16, #tpu.memory_space<vmem>>, %arg2: memref<4x1x8x8xbf16, #tpu.memory_space<vmem>>, %arg3: memref<4x1x8x8xbf16, #tpu.memory_space<vmem>>, %arg4: memref<3x8x8xbf16, #tpu.memory_space<vmem>>, %arg5: memref<4x8x128xbf16, #tpu.memory_space<vmem>>, %arg6: memref<1x1x128xf32, #tpu.memory_space<vmem>>, %arg7: memref<1x8x128xf32, #tpu.memory_space<vmem>>) attributes {dimension_semantics = [#tpu.dimension_semantics<parallel>], iteration_bounds = array<i64: 2>, scalar_prefetch = 0 : i64, scratch_operands = 0 : i64, tpu.core_type = #tpu.core_type<tc>, window_params = [{transform_indices = @transform_0, window_bounds = array<i64: 4, 1, 8, 8>}, {transform_indices = @transform_1, window_bounds = array<i64: 4, 1, 8, 8>}, {transform_indices = @transform_2, window_bounds = array<i64: 4, 1, 8, 8>}, {pipeline_mode = #tpu.pipeline_mode<synchronous>, transform_indices = @transform_3, window_bounds = array<i64: 3, 8, 8>}, {pipeline_mode = #tpu.pipeline_mode<synchronous>, transform_indices = @transform_4, window_bounds = array<i64: 4, 8, 128>}, {pipeline_mode = #tpu.pipeline_mode<synchronous>, transform_indices = @transform_5, window_bounds = array<i64: 1, 1, 128>}, {transform_indices = @transform_6, window_bounds = array<i64: 1, 8, 128>}]} {
    %c0 = arith.constant 0 : index
    %c0_0 = arith.constant 0 : index
    %c0_1 = arith.constant 0 : index
    %c0_2 = arith.constant 0 : index
    %0 = vector.load %arg1[%c0, %c0_0, %c0_1, %c0_2] : memref<4x1x8x8xbf16, #tpu.memory_space<vmem>>, vector<4x1x8x8xbf16>
    %1 = vector.shape_cast %0 : vector<4x1x8x8xbf16> to vector<32x8xbf16>
    %c0_3 = arith.constant 0 : index
    %c0_4 = arith.constant 0 : index
    %c0_5 = arith.constant 0 : index
    %c0_6 = arith.constant 0 : index
    %2 = vector.load %arg2[%c0_3, %c0_4, %c0_5, %c0_6] : memref<4x1x8x8xbf16, #tpu.memory_space<vmem>>, vector<4x1x8x8xbf16>
    %3 = vector.shape_cast %2 : vector<4x1x8x8xbf16> to vector<32x8xbf16>
    %c0_7 = arith.constant 0 : index
    %c0_8 = arith.constant 0 : index
    %c0_9 = arith.constant 0 : index
    %c0_10 = arith.constant 0 : index
    %4 = vector.load %arg3[%c0_7, %c0_8, %c0_9, %c0_10] : memref<4x1x8x8xbf16, #tpu.memory_space<vmem>>, vector<4x1x8x8xbf16>
    %5 = vector.shape_cast %4 : vector<4x1x8x8xbf16> to vector<32x8xbf16>
    %c0_11 = arith.constant 0 : index
    %c0_12 = arith.constant 0 : index
    %c0_13 = arith.constant 0 : index
    %6 = vector.load %arg4[%c0_11, %c0_12, %c0_13] : memref<3x8x8xbf16, #tpu.memory_space<vmem>>, vector<1x8x8xbf16>
    %7 = vector.shape_cast %6 : vector<1x8x8xbf16> to vector<8x8xbf16>
    %cst = arith.constant dense<0.000000e+00> : vector<32x8xf32>
    %8 = tpu.matmul %1, %7, %cst {dimension_numbers = #tpu.dot_dimension_numbers<[1], [0], [0], [1], [0, 0, 1, 1], [], []>} : vector<32x8xbf16>, vector<8x8xbf16>, vector<32x8xf32> -> vector<32x8xf32>
    %9 = arith.truncf %8 : vector<32x8xf32> to vector<32x8xbf16>
    %10 = vector.shape_cast %9 : vector<32x8xbf16> to vector<4x8x8xbf16>
    %c1 = arith.constant 1 : index
    %c0_14 = arith.constant 0 : index
    %c0_15 = arith.constant 0 : index
    %11 = vector.load %arg4[%c1, %c0_14, %c0_15] : memref<3x8x8xbf16, #tpu.memory_space<vmem>>, vector<1x8x8xbf16>
    %12 = vector.shape_cast %11 : vector<1x8x8xbf16> to vector<8x8xbf16>
    %cst_16 = arith.constant dense<0.000000e+00> : vector<32x8xf32>
    %13 = tpu.matmul %3, %12, %cst_16 {dimension_numbers = #tpu.dot_dimension_numbers<[1], [0], [0], [1], [0, 0, 1, 1], [], []>} : vector<32x8xbf16>, vector<8x8xbf16>, vector<32x8xf32> -> vector<32x8xf32>
    %14 = arith.truncf %13 : vector<32x8xf32> to vector<32x8xbf16>
    %15 = vector.shape_cast %14 : vector<32x8xbf16> to vector<4x8x8xbf16>
    %c2 = arith.constant 2 : index
    %c0_17 = arith.constant 0 : index
    %c0_18 = arith.constant 0 : index
    %16 = vector.load %arg4[%c2, %c0_17, %c0_18] : memref<3x8x8xbf16, #tpu.memory_space<vmem>>, vector<1x8x8xbf16>
    %17 = vector.shape_cast %16 : vector<1x8x8xbf16> to vector<8x8xbf16>
    %cst_19 = arith.constant dense<0.000000e+00> : vector<32x8xf32>
    %18 = tpu.matmul %5, %17, %cst_19 {dimension_numbers = #tpu.dot_dimension_numbers<[1], [0], [0], [1], [0, 0, 1, 1], [], []>} : vector<32x8xbf16>, vector<8x8xbf16>, vector<32x8xf32> -> vector<32x8xf32>
    %19 = arith.truncf %18 : vector<32x8xf32> to vector<32x8xbf16>
    %20 = vector.shape_cast %19 : vector<32x8xbf16> to vector<4x8x8xbf16>
    "tpu.trace_start"() <{level = 10 : i32, message = "zqd,zkd->zqk"}> : () -> ()
    %cst_20 = arith.constant dense<0.000000e+00> : vector<4x8x8xf32>
    %21 = tpu.matmul %10, %15, %cst_20 {dimension_numbers = #tpu.dot_dimension_numbers<[2], [2], [1], [1], [0, 0, 0, 1, 1, 1], [0], [0]>} : vector<4x8x8xbf16>, vector<4x8x8xbf16>, vector<4x8x8xf32> -> vector<4x8x8xf32>
    "tpu.trace_stop"() : () -> ()
    %cst_21 = arith.constant 0.176776692 : f32
    %22 = vector.broadcast %cst_21 : f32 to vector<4x8x8xf32>
    %23 = arith.mulf %21, %22 : vector<4x8x8xf32>
    %cst_22 = arith.constant -5.000000e+00 : f32
    %cst_23 = arith.constant 5.000000e+00 : f32
    %24 = vector.broadcast %cst_22 : f32 to vector<4x8x8xf32>
    %25 = arith.maximumf %24, %23 : vector<4x8x8xf32>
    %26 = vector.broadcast %cst_23 : f32 to vector<4x8x8xf32>
    %27 = arith.minimumf %26, %25 : vector<4x8x8xf32>
    %cst_24 = arith.constant dense<0xFF800000> : vector<4x8xf32>
    %28 = vector.multi_reduction <maximumf>, %27, %cst_24 [2] : vector<4x8x8xf32> to vector<4x8xf32>
    %29 = vector.shape_cast %28 : vector<4x8xf32> to vector<4x8x1xf32>
    %30 = vector.broadcast %29 : vector<4x8x1xf32> to vector<4x8x8xf32>
    %31 = arith.subf %27, %30 : vector<4x8x8xf32>
    %32 = math.exp %31 : vector<4x8x8xf32>
    %cst_25 = arith.constant dense<0.000000e+00> : vector<4x8xf32>
    %33 = vector.multi_reduction <add>, %32, %cst_25 [2] : vector<4x8x8xf32> to vector<4x8xf32>
    %34 = vector.shape_cast %33 : vector<4x8xf32> to vector<4x8x1xf32>
    %35 = tpu.reciprocal %34 {approx = true} : vector<4x8x1xf32> -> vector<4x8x1xf32>
    %36 = vector.broadcast %35 : vector<4x8x1xf32> to vector<4x8x8xf32>
    %37 = arith.mulf %32, %36 : vector<4x8x8xf32>
    %38 = arith.truncf %37 : vector<4x8x8xf32> to vector<4x8x8xbf16>
    "tpu.trace_start"() <{level = 10 : i32, message = "zqk,zkd->zqd"}> : () -> ()
    %cst_26 = arith.constant dense<0.000000e+00> : vector<4x8x8xf32>
    %39 = tpu.matmul %38, %20, %cst_26 {dimension_numbers = #tpu.dot_dimension_numbers<[2], [1], [1], [2], [0, 0, 0, 1, 1, 2], [0], [0]>} : vector<4x8x8xbf16>, vector<4x8x8xbf16>, vector<4x8x8xf32> -> vector<4x8x8xf32>
    "tpu.trace_stop"() : () -> ()
    %40 = arith.truncf %39 : vector<4x8x8xf32> to vector<4x8x8xbf16>
    %cst_27 = arith.constant 0.000000e+00 : f32
    %41 = vector.broadcast %cst_27 : f32 to vector<8x128xf32>
    %42 = vector.extract_strided_slice %40 {offsets = [0, 0, 0], sizes = [1, 8, 8], strides = [1, 1, 1]} : vector<4x8x8xbf16> to vector<1x8x8xbf16>
    %43 = vector.shape_cast %42 : vector<1x8x8xbf16> to vector<8x8xbf16>
    %c0_28 = arith.constant 0 : index
    %c0_29 = arith.constant 0 : index
    %c0_30 = arith.constant 0 : index
    %44 = vector.load %arg5[%c0_28, %c0_29, %c0_30] : memref<4x8x128xbf16, #tpu.memory_space<vmem>>, vector<1x8x128xbf16>
    %45 = vector.shape_cast %44 : vector<1x8x128xbf16> to vector<8x128xbf16>
    %cst_31 = arith.constant dense<0.000000e+00> : vector<8x128xf32>
    %46 = tpu.matmul %43, %45, %cst_31 {dimension_numbers = #tpu.dot_dimension_numbers<[1], [0], [0], [1], [0, 0, 1, 1], [], []>} : vector<8x8xbf16>, vector<8x128xbf16>, vector<8x128xf32> -> vector<8x128xf32>
    %47 = arith.addf %41, %46 : vector<8x128xf32>
    %48 = vector.extract_strided_slice %40 {offsets = [1, 0, 0], sizes = [1, 8, 8], strides = [1, 1, 1]} : vector<4x8x8xbf16> to vector<1x8x8xbf16>
    %49 = vector.shape_cast %48 : vector<1x8x8xbf16> to vector<8x8xbf16>
    %c1_32 = arith.constant 1 : index
    %c0_33 = arith.constant 0 : index
    %c0_34 = arith.constant 0 : index
    %50 = vector.load %arg5[%c1_32, %c0_33, %c0_34] : memref<4x8x128xbf16, #tpu.memory_space<vmem>>, vector<1x8x128xbf16>
    %51 = vector.shape_cast %50 : vector<1x8x128xbf16> to vector<8x128xbf16>
    %cst_35 = arith.constant dense<0.000000e+00> : vector<8x128xf32>
    %52 = tpu.matmul %49, %51, %cst_35 {dimension_numbers = #tpu.dot_dimension_numbers<[1], [0], [0], [1], [0, 0, 1, 1], [], []>} : vector<8x8xbf16>, vector<8x128xbf16>, vector<8x128xf32> -> vector<8x128xf32>
    %53 = arith.addf %47, %52 : vector<8x128xf32>
    %54 = vector.extract_strided_slice %40 {offsets = [2, 0, 0], sizes = [1, 8, 8], strides = [1, 1, 1]} : vector<4x8x8xbf16> to vector<1x8x8xbf16>
    %55 = vector.shape_cast %54 : vector<1x8x8xbf16> to vector<8x8xbf16>
    %c2_36 = arith.constant 2 : index
    %c0_37 = arith.constant 0 : index
    %c0_38 = arith.constant 0 : index
    %56 = vector.load %arg5[%c2_36, %c0_37, %c0_38] : memref<4x8x128xbf16, #tpu.memory_space<vmem>>, vector<1x8x128xbf16>
    %57 = vector.shape_cast %56 : vector<1x8x128xbf16> to vector<8x128xbf16>
    %cst_39 = arith.constant dense<0.000000e+00> : vector<8x128xf32>
    %58 = tpu.matmul %55, %57, %cst_39 {dimension_numbers = #tpu.dot_dimension_numbers<[1], [0], [0], [1], [0, 0, 1, 1], [], []>} : vector<8x8xbf16>, vector<8x128xbf16>, vector<8x128xf32> -> vector<8x128xf32>
    %59 = arith.addf %53, %58 : vector<8x128xf32>
    %60 = vector.extract_strided_slice %40 {offsets = [3, 0, 0], sizes = [1, 8, 8], strides = [1, 1, 1]} : vector<4x8x8xbf16> to vector<1x8x8xbf16>
    %61 = vector.shape_cast %60 : vector<1x8x8xbf16> to vector<8x8xbf16>
    %c3 = arith.constant 3 : index
    %c0_40 = arith.constant 0 : index
    %c0_41 = arith.constant 0 : index
    %62 = vector.load %arg5[%c3, %c0_40, %c0_41] : memref<4x8x128xbf16, #tpu.memory_space<vmem>>, vector<1x8x128xbf16>
    %63 = vector.shape_cast %62 : vector<1x8x128xbf16> to vector<8x128xbf16>
    %cst_42 = arith.constant dense<0.000000e+00> : vector<8x128xf32>
    %64 = tpu.matmul %61, %63, %cst_42 {dimension_numbers = #tpu.dot_dimension_numbers<[1], [0], [0], [1], [0, 0, 1, 1], [], []>} : vector<8x8xbf16>, vector<8x128xbf16>, vector<8x128xf32> -> vector<8x128xf32>
    %65 = arith.addf %59, %64 : vector<8x128xf32>
    %66 = vector.shape_cast %65 : vector<8x128xf32> to vector<1x8x128xf32>
    %c0_43 = arith.constant 0 : index
    %c0_44 = arith.constant 0 : index
    %c0_45 = arith.constant 0 : index
    %67 = vector.load %arg6[%c0_43, %c0_44, %c0_45] : memref<1x1x128xf32, #tpu.memory_space<vmem>>, vector<1x1x128xf32>
    %68 = vector.broadcast %67 : vector<1x1x128xf32> to vector<1x8x128xf32>
    %69 = arith.addf %66, %68 : vector<1x8x128xf32>
    %c0_46 = arith.constant 0 : index
    %c0_47 = arith.constant 0 : index
    %c0_48 = arith.constant 0 : index
    %70 = vector.load %arg7[%c0_46, %c0_47, %c0_48] : memref<1x8x128xf32, #tpu.memory_space<vmem>>, vector<1x8x128xf32>
    tpu.vector_store %arg7[%c0_46, %c0_47, %c0_48], %69 {strides = array<i32>} : memref<1x8x128xf32, #tpu.memory_space<vmem>>, vector<1x8x128xf32>,
    return
  }
  func.func @transform_0(%arg0: i32) -> (i32, i32, i32, i32) {
    %c0_i32 = arith.constant 0 : i32
    %c0_i32_0 = arith.constant 0 : i32
    %c0_i32_1 = arith.constant 0 : i32
    %c0_i32_2 = arith.constant 0 : i32
    return %c0_i32, %arg0, %c0_i32_0, %c0_i32_1 : i32, i32, i32, i32
  }
  func.func @transform_1(%arg0: i32) -> (i32, i32, i32, i32) {
    %c0_i32 = arith.constant 0 : i32
    %c0_i32_0 = arith.constant 0 : i32
    %c0_i32_1 = arith.constant 0 : i32
    %c0_i32_2 = arith.constant 0 : i32
    return %c0_i32, %arg0, %c0_i32_0, %c0_i32_1 : i32, i32, i32, i32
  }
  func.func @transform_2(%arg0: i32) -> (i32, i32, i32, i32) {
    %c0_i32 = arith.constant 0 : i32
    %c0_i32_0 = arith.constant 0 : i32
    %c0_i32_1 = arith.constant 0 : i32
    %c0_i32_2 = arith.constant 0 : i32
    return %c0_i32, %arg0, %c0_i32_0, %c0_i32_1 : i32, i32, i32, i32
  }
  func.func @transform_3(%arg0: i32) -> (i32, i32, i32) {
    %c0_i32 = arith.constant 0 : i32
    %c0_i32_0 = arith.constant 0 : i32
    %c0_i32_1 = arith.constant 0 : i32
    %c0_i32_2 = arith.constant 0 : i32
    return %c0_i32, %c0_i32_0, %c0_i32_1 : i32, i32, i32
  }
  func.func @transform_4(%arg0: i32) -> (i32, i32, i32) {
    %c0_i32 = arith.constant 0 : i32
    %c0_i32_0 = arith.constant 0 : i32
    %c0_i32_1 = arith.constant 0 : i32
    %c0_i32_2 = arith.constant 0 : i32
    return %c0_i32, %c0_i32_0, %c0_i32_1 : i32, i32, i32
  }
  func.func @transform_5(%arg0: i32) -> (i32, i32, i32) {
    %c0_i32 = arith.constant 0 : i32
    %c0_i32_0 = arith.constant 0 : i32
    %c0_i32_1 = arith.constant 0 : i32
    %c0_i32_2 = arith.constant 0 : i32
    return %c0_i32, %c0_i32_0, %c0_i32_1 : i32, i32, i32
  }
  func.func @transform_6(%arg0: i32) -> (i32, i32, i32) {
    %c0_i32 = arith.constant 0 : i32
    %c0_i32_0 = arith.constant 0 : i32
    %c0_i32_1 = arith.constant 0 : i32
    return %arg0, %c0_i32, %c0_i32_0 : i32, i32, i32
  }
}

</mosaic_0001>

<bundles_post_ra>
// kernel: tself_attention_forward.1
= control target key start
LH: loop header
LB: loop body
LE: loop exit
PB: predicated region body
PF: predicated region fallthrough
CT: control target
= control target key end

     0   :  { %11 = vsyncpa [#allocation6], 0  ;;  %s2070_s0 = inlined_call_operand.vmem [shape: bf16[4,2,8,8], index: 0, kind: input, shape index: {}]   ;;  %s2071_s1 = inlined_call_operand.vmem [shape: bf16[4,2,8,8], index: 1, kind: input, shape index: {}]   ;;  %s2072_s2 = inlined_call_operand.vmem [shape: bf16[4,2,8,8], index: 2, kind: input, shape index: {}]   ;;  %s2073_s3 = inlined_call_operand.vmem [shape: bf16[3,8,8], index: 3, kind: input, shape index: {}]   ;;  %s2074_s4 = inlined_call_operand.vmem [shape: bf16[4,8,128], index: 4, kind: input, shape index: {}]   ;;  %s2075_s5 = inlined_call_operand.vmem [shape: f32[1,1,128], index: 5, kind: input, shape index: {}]   ;;  %s2076_s6 = inlined_call_operand.hbm [shape: f32[2,8,128], index: 6, kind: output, shape index: {}]  }
   0x1   :  { %13 = vsyncpa [#allocation6 + $0x1], 0  ;;  %s1829_s21 = smov 0   ;;  %s1831_s22 = smov 0  }
   0x2   :  { %s1833_s23 = smov 0   ;;  %s1835_s24 = smov 0  }
   0x3 LB: > { %s1463_s25 = sadd.s32 4294967295, %s1789_s24   ;;  %s1464_s26 = sadd.s32 4294967294, %s1789_s24   ;;  %s1789_s24 = sphi %s1835_s24, %s2083_s24   ;;  %s1785_s23 = sphi %s1833_s23, %s2082_s23   ;;  %s1781_s22 = sphi %s1831_s22, %s2081_s22   ;;  %s1777_s21 = sphi %s1829_s21, %s2080_s21  }
   0x4   : > { %s1852_s27 = sadd.s32 1, %s1789_s24   ;;  %s26_s28 = sadd.s32 1, %s1785_s23 }
   0x5   : > { %s23_s29 = ssub.s32 %s1789_s24, %s1852_s27  ;;  %p33_p0 = scmp.ne.s32.totalorder %s1785_s23, %s1781_s22 }
   0x6   : > { %p24_p1 = scmp.eq.s32.totalorder %s23_s29, 0  ;;  %p34_p2 = scmp.eq.s32.totalorder %s1789_s24, 0 }
   0x7   : > { %p178_p3 = scmp.eq.s32.totalorder %s1463_s25, 1  ;;  %p183_p4 = scmp.ne.s32.totalorder %s1781_s22, %s1777_s21 }
   0x8   : > { %s1865_s30 = scalar_select %p24_p1, %s1785_s23, %s26_s28  }
   0x9   : > { %p1867_p5 = por %p34_p2, %p33_p0  ;;  %p1871_p6 = por %p178_p3, %p33_p0 }
   0xa   : > { %p184_p7 = scmp.eq.s32.totalorder %s1464_s26, 1  ;;  %p1466_p9 = scmp.ge.s32.totalorder %s1789_s24, 2 }
   0xc   : > { %p1875_p8 = por %p184_p7, %p183_p4  ;;  %209 = sbr.rel (%p1466_p9) target bundleno = 35 (0x23), region = 28 }
  0x11   : > { %212 = sbr.rel (!%p1867_p5) target bundleno = 23 (0x17), region = 32  ;;  %s214_s10 = sand.u32 (%p1867_p5), 1, %s1785_s23  }
  0x12   : > { %s1468_s11 = sshll.u32 (%p1867_p5), %s1789_s24, 2  ;;  %s1467_s12 = sshll.u32 (%p1867_p5), %s214_s10, 4 }
  0x13   : > { %s218_s15 = scalar_lea.vmem (%p1867_p5), %s2070_s0, %s1468_s11  ;;  %s216_s16 = scalar_lea.vmem (%p1867_p5), [#allocation2], %s1467_s12 }
  0x14   : > { %v235_v0 = vld [vmem:[%s218_s15] sm:$0xf] (%p1867_p5)  ;;  %v237_v1 = vld [vmem:[%s218_s15 + $0x8] sm:$0xf] (%p1867_p5)  ;;  %v239_v2 = vld [vmem:[%s218_s15 + $0x10] sm:$0xf] (%p1867_p5) }
  0x15   : > { %236 = vst [vmem:[%s216_s16] sm:$0xf] (%p1867_p5), %v235_v0  ;;  %238 = vst [vmem:[%s216_s16 + $0x4] sm:$0xf] (%p1867_p5), %v237_v1  ;;  %v241_v3 = vld [vmem:[%s218_s15 + $0x18] sm:$0xf] (%p1867_p5) }
  0x16   : > { %240 = vst [vmem:[%s216_s16 + $0x8] sm:$0xf] %v239_v2  ;;  %242 = vst [vmem:[%s216_s16 + $0xc] sm:$0xf] %v241_v3 }
  0x17 PF: > { %274 = sbr.rel (!%p1867_p5) target bundleno = 29 (0x1d), region = 73  ;;  %s276_s17 = sand.u32 (%p1867_p5), 1, %s1785_s23  }
  0x18   : > { %s1470_s18 = sshll.u32 (%p1867_p5), %s1789_s24, 2  ;;  %s1469_s19 = sshll.u32 (%p1867_p5), %s276_s17, 4 }
  0x19   : > { %s280_s28 = scalar_lea.vmem (%p1867_p5), %s2071_s1, %s1470_s18  ;;  %s278_s29 = scalar_lea.vmem (%p1867_p5), [#allocation3], %s1469_s19 }
  0x1a   : > { %v297_v4 = vld [vmem:[%s280_s28] sm:$0xf] (%p1867_p5)  ;;  %v299_v5 = vld [vmem:[%s280_s28 + $0x8] sm:$0xf] (%p1867_p5)  ;;  %v301_v6 = vld [vmem:[%s280_s28 + $0x10] sm:$0xf] (%p1867_p5) }
  0x1b   : > { %298 = vst [vmem:[%s278_s29] sm:$0xf] (%p1867_p5), %v297_v4  ;;  %300 = vst [vmem:[%s278_s29 + $0x4] sm:$0xf] (%p1867_p5), %v299_v5  ;;  %v303_v7 = vld [vmem:[%s280_s28 + $0x18] sm:$0xf] (%p1867_p5) }
  0x1c   : > { %302 = vst [vmem:[%s278_s29 + $0x8] sm:$0xf] %v301_v6  ;;  %304 = vst [vmem:[%s278_s29 + $0xc] sm:$0xf] %v303_v7 }
  0x1d PF: > { %336 = sbr.rel (!%p1867_p5) target bundleno = 35 (0x23), region = 114  ;;  %s338_s10 = sand.u32 (%p1867_p5), 1, %s1785_s23  }
  0x1e   : > { %s1472_s11 = sshll.u32 (%p1867_p5), %s1789_s24, 2  ;;  %s1471_s12 = sshll.u32 (%p1867_p5), %s338_s10, 4 }
  0x1f   : > { %s342_s15 = scalar_lea.vmem (%p1867_p5), %s2072_s2, %s1472_s11  ;;  %s340_s16 = scalar_lea.vmem (%p1867_p5), [#allocation4], %s1471_s12 }
  0x20   : > { %v359_v8 = vld [vmem:[%s342_s15] sm:$0xf] (%p1867_p5)  ;;  %v361_v9 = vld [vmem:[%s342_s15 + $0x8] sm:$0xf] (%p1867_p5)  ;;  %v363_v10 = vld [vmem:[%s342_s15 + $0x10] sm:$0xf] (%p1867_p5) }
  0x21   : > { %360 = vst [vmem:[%s340_s16] sm:$0xf] (%p1867_p5), %v359_v8  ;;  %362 = vst [vmem:[%s340_s16 + $0x4] sm:$0xf] (%p1867_p5), %v361_v9  ;;  %v365_v11 = vld [vmem:[%s342_s15 + $0x18] sm:$0xf] (%p1867_p5) }
  0x22   : > { %364 = vst [vmem:[%s340_s16 + $0x8] sm:$0xf] %v363_v10  ;;  %366 = vst [vmem:[%s340_s16 + $0xc] sm:$0xf] %v365_v11 }
  0x23 PF: > { %p1473_p10 = scmp.ge.s32.totalorder %s1789_s24, 1  ;;  %p397_p11 = scmp.lt.s32.totalorder %s1789_s24, 3 }
  0x25   : > { %p398_p12 = pnand %p1473_p10, %p397_p11 }
  0x26   : > { %s1912_s20 = sand.u32 (!%p398_p12), 1, %s1781_s22   ;;  %s1793_s7 = smov (!%p398_p12), [#allocation5]  }
  0x27   : > { %401 = sbr.rel (%p398_p12) target bundleno = 1184 (0x4a0), region = 155  ;;  %s1474_s26 = sshll.u32 (!%p398_p12), %s1912_s20, 4 }
  0x28   : > { %s413_s28 = scalar_lea.vmem (!%p398_p12), [#allocation3], %s1474_s26  ;;  %s406_s29 = scalar_lea.vmem (!%p398_p12), [#allocation2], %s1474_s26 }
  0x29   : > { %s420_s10 = scalar_lea.vmem (!%p398_p12), [#allocation4], %s1474_s26  ;;  %s1477_s26 = sshll.u32 (!%p398_p12), %s1912_s20, 3 }
  0x2a   : > { %s454_s11 = scalar_lea.vmem (!%p398_p12), [#allocation5], %s1477_s26  ;;  %s1733_s17 = sshll.u32 (!%p398_p12), %s1793_s7, 4  ;;  %s1734_s17 = int_to_ptr.vmem [resolvable:$false] %s1733_s17 }
  0x2b   : > { %s1363_s12 = sshll.u32 (!%p398_p12), %s454_s11, 4  ;;  %s1735_s18 = scalar_lea.vmem (!%p398_p12), %s1734_s17, 256  ;;  %s2029_s12 = int_to_ptr.vmem [resolvable:$true] %s1363_s12 }
  0x2c   : > { %vm486_vm0 = vcmask 1043456   ;;  %v1486_v12 = vld [vmem:[%s2073_s3 + $0x4] sm:$0xf]  ;;  %v468_v13 = vld [vmem:[%s2073_s3] sm:$0xf]  ;;  %vm479_vm1 = vcmask 64512   ;;  %p1736_p2 = scmp.lt.s32.totalorder %s2029_s12, %s1734_s17 }
  0x2d   : > { %1664 = vmatprep.subr.msk.bf16.mxu1 %vm486_vm0, %v1486_v12  ;;  %v570_v14 = vsel %vm486_vm0, %v1486_v12, 0  ;;  %1663 = vmatprep.subr.msk.bf16.mxu0 %vm486_vm0, %v468_v13  ;;  %v488_v15 = vsel %vm486_vm0, %v468_v13, 0  ;;  %v1707_v16 = vld [vmem:[%s413_s28] sm:$0xff]   ;;  %v1708_v17 = vld [vmem:[%s413_s28 + $0x8] sm:$0xff]   ;;  %v1791_v24 = vmov 0.0   ;;  %vm1792_vm2 = vmmov 0  }
  0x2e   : > { %1580 = vmatpush3.bf16.msra.mxu1 %v570_v14  ;;  %1574 = vmatpush3.bf16.msra.mxu0 %v488_v15  ;;  %v1709_v18 = vld [vmem:[%s406_s29] sm:$0xff]   ;;  %v1710_v19 = vld [vmem:[%s406_s29 + $0x8] sm:$0xff]   ;;  %s1729_s16 = scalar_lea.vmem %s2029_s12, 128 }
  0x2f   : > { %1581 = vmatprep.mubr.msk.bf16.mxu1 %vm479_vm1, %v1707_v16  ;;  %1575 = vmatprep.mubr.msk.bf16.mxu0 %vm479_vm1, %v1709_v18  ;;  %v1495_v20 = vld [vmem:[%s2073_s3 + $0x8] sm:$0xf]  ;;  %v1711_v22 = vld [vmem:[%s420_s10] sm:$0xff]   ;;  %p1730_p13 = scmp.ne.s32.totalorder %s2029_s12, %s1729_s16  ;;  %p1737_p3 = scmp.lt.s32.totalorder %s1735_s18, %s1729_s16 }
  0x30   : > { %1665 = vmatprep.subr.msk.bf16.mxu0 %vm486_vm0, %v1495_v20  ;;  %v652_v21 = vsel %vm486_vm0, %v1495_v20, 0  ;;  %v1712_v23 = vld [vmem:[%s420_s10 + $0x8] sm:$0xff]   ;;  %1591 = vmatprep.subr.bf16.mxu1 %v1791_v24  ;;  %s1525_s10 = sshll.u32 %s1463_s25, 7  ;;  %s1350_s25 = scalar_lea.sflag [#allocation6], %s1912_s20 }
  0x31   : > { %1582 = vmatmul.mubr.msk.bf16.vlgmr.msra.gmra.mxu1 %vm479_vm1, %v1708_v17  ;;  %1576 = vmatmul.mubr.msk.bf16.vlgmr.msra.gmra.mxu0 %vm479_vm1, %v1710_v19  ;;  %s2027_s15 = scalar_lea.hbm %s2076_s6, %s1525_s10  ;;  %p1731_p0 = pnand %p1730_p13, %p1871_p6 }
  0x32   : > { %1586 = vmatpush3.bf16.msra.mxu0 %v652_v21  ;;  %1587 = vmatprep.mubr.msk.bf16.mxu0 %vm479_vm1, %v1711_v22  ;;  %p1738_p4 = por %p1737_p3, %p1736_p2 }
  0x33   : > { %1597 = vmatprep.subr.bf16.mxu0 %v1791_v24  ;;  %1593 = vmatprep.mubr.msk.bf16.mxu1 %vm1792_vm2, %v1791_v24  ;;  %p1732_p1 = pneg %p1731_p0 }
  0x35   : > { %p1739_p5 = pnand %p1738_p4, %p1732_p1 }
  0x39   : > { %1588 = vmatmul.mubr.msk.bf16.vlgmr.msra.gmra.mxu0 %vm479_vm1, %v1712_v23 }
  0x3a   : > { %1599 = vmatprep.mubr.msk.bf16.mxu0 %vm1792_vm2, %v1791_v24 }
  0xf1   : > { %v1583_v25 = vpop.f32.mrf.mxu1  ;;  %v1577_v27 = vpop.f32.mrf.mxu0 }
  0xf2   : > { %v1534_v35 = vpack.c.bf16 %v1583_v25, %v1583_v25  ;;  %v1530_v43 = vpack.c.bf16 %v1577_v27, %v1577_v27 }
  0xf3   : > { %v606_v26 = vpop.f32.mrf.mxu1  ;;  %v524_v30 = vpop.f32.mrf.mxu0 }
  0xf4   : > { %v1532_v28 = vpack.c.bf16 %v606_v26, %v606_v26  ;;  %v1528_v37 = vpack.c.bf16 %v524_v30, %v524_v30  ;;  %v811_v39 = vsel %vm479_vm1, %v1534_v35, 0 }
  0xf5   : > { %v1584_v29 = vpop.f32.mrf.mxu1  ;;  %v1578_v34 = vpop.f32.mrf.mxu0 }
  0xf6   : > { %v719_v31 = vsel %vm479_vm1, %v1532_v28, 0  ;;  %v1535_v40 = vpack.c.bf16 %v1584_v29, %v1584_v29  ;;  %v1531_v44 = vpack.c.bf16 %v1578_v34, %v1578_v34 }
  0xf7   : > { %v609_v32 = vpop.f32.mrf.mxu1  ;;  %1592 = vmatpush3.bf16.xpose.msra.mxu1 %v719_v31  ;;  %v527_v38 = vpop.f32.mrf.mxu0 }
  0xf8   : > { %v1533_v33 = vpack.c.bf16 %v609_v32, %v609_v32  ;;  %1603 = vmatprep.subr.bf16.mxu1 %v1791_v24  ;;  %v1529_v41 = vpack.c.bf16 %v527_v38, %v527_v38  ;;  %v857_v42 = vsel %vm479_vm1, %v1535_v40, 0 }
  0xf9   : > { %v1956_v45 = vpop.f32.mrf.mxu0 }
  0xfa   : > { %v765_v36 = vsel %vm479_vm1, %v1533_v33, 0 }
  0xfb   : > { %1598 = vmatpush3.bf16.xpose.msra.mxu0 %v765_v36  ;;  %v688_v46 = vpop.f32.mrf.mxu0 }
  0xfc   : > { %1609 = vmatprep.subr.bf16.mxu0 %v1791_v24  ;;  %v1536_v47 = vpack.c.bf16 %v688_v46, %v688_v46 }
  0xfd   : > { %v1958_v48 = vpop.f32.mrf.mxu0 }
  0xfe   : > { %1594 = vmatmul.mubr.msk.bf16.vlgmr.msra.gmra.mxu1 %vm479_vm1, %v1528_v37  ;;  %v963_v49 = vsel %vm486_vm0, %v1536_v47, 0 }
  0xff   : > { %1604 = vmatpush3.bf16.xpose.msra.mxu1 %v811_v39  ;;  %1605 = vmatprep.mubr.msk.bf16.mxu1 %vm1792_vm2, %v1791_v24  ;;  %v691_v50 = vpop.f32.mrf.mxu0 }
 0x100   : > { %1615 = vmatprep.subr.bf16.mxu1 %v1791_v24  ;;  %v1537_v51 = vpack.c.bf16 %v691_v50, %v691_v50  ;;  %v1539_v50 = vpack.c.bf16 %v1958_v48, %v1958_v48 }
 0x102   : > { %1600 = vmatmul.mubr.msk.bf16.vlgmr.msra.gmra.mxu0 %vm479_vm1, %v1529_v41  ;;  %v1009_v52 = vsel %vm486_vm0, %v1537_v51, 0 }
 0x103   : > { %1610 = vmatpush3.bf16.xpose.msra.mxu0 %v857_v42  ;;  %1611 = vmatprep.mubr.msk.bf16.mxu0 %vm1792_vm2, %v1791_v24 }
 0x104   : > { %1621 = vmatprep.subr.bf16.mxu0 %v1791_v24 }
 0x106   : > { %1606 = vmatmul.mubr.msk.bf16.vlgmr.msra.gmra.mxu1 %vm479_vm1, %v1530_v43  ;;  %v1538_v43 = vpack.c.bf16 %v1956_v45, %v1956_v45  ;;  %v1101_v45 = vsel %vm486_vm0, %v1539_v50, 0 }
 0x107   : > { %1617 = vmatprep.mubr.msk.bf16.mxu1 %vm1792_vm2, %v1791_v24  ;;  %1616 = vmatpush3.bf16.msra.mxu1 %v963_v49 }
 0x108   : > { %1627 = vmatprep.subr.bf16.mxu1 %v1791_v24  ;;  %v1055_v49 = vsel %vm486_vm0, %v1538_v43, 0 }
 0x10a   : > { %1612 = vmatmul.mubr.msk.bf16.vlgmr.msra.gmra.mxu0 %vm479_vm1, %v1531_v44 }
 0x10b   : > { %1623 = vmatprep.mubr.msk.bf16.mxu0 %vm1792_vm2, %v1791_v24  ;;  %1622 = vmatpush3.bf16.msra.mxu0 %v1009_v52 }
 0x10c   : > { %1633 = vmatprep.subr.bf16.mxu0 %v1791_v24 }
 0x1be   : > { %v755_v53 = vpop.f32.mrf.mxu1 }
 0x1bf   : > { %v899_v54 = vmul.f32 0.17677669, %v755_v53 }
 0x1c0   : > { %v1595_v55 = vpop.f32.mrf.mxu1 }
 0x1c1   : > { %v1508_v56 = vclamps-f32 %v899_v54, 5.0 }
 0x1c2   : > { %v758_v57 = vpop.f32.mrf.mxu1  ;;  %v801_v58 = vpop.f32.mrf.mxu0 }
 0x1c3   : > { %v900_v59 = vmul.f32 0.17677669, %v801_v58  ;;  %v911_v60 = vsel %vm479_vm1, %v1508_v56, -inf  ;;  %v1147_v58 = vld [vmem:[%s2074_s4] sm:$0xf] }
 0x1c4   : > { %912 = vmax.xlane.f32.xlu0 %v911_v60  ;;  %v1596_v61 = vpop.f32.mrf.mxu1  ;;  %v1601_v62 = vpop.f32.mrf.mxu0  ;;  %v1516_v60 = vld [vmem:[%s2074_s4 + $0x4] sm:$0xf] }
 0x1c5   : > { %v1509_v63 = vclamps-f32 %v900_v59, 5.0  ;;  %v1200_v59 = vsel %vm486_vm0, %v1147_v58, 0  ;;  %v1154_v61 = vsel %vm486_vm0, %v1516_v60, 0  ;;  %v1521_v62 = vld [vmem:[%s2074_s4 + $0xc] sm:$0xf] }
 0x1c6   : > { %v804_v0 = vpop.f32.mrf.mxu0  ;;  %v847_v1 = vpop.f32.mrf.mxu1 }
 0x1c7   : > { %v901_v2 = vmul.f32 0.17677669, %v847_v1  ;;  %v914_v3 = vsel %vm479_vm1, %v1509_v63, -inf  ;;  %v1297_v1 = vsel %vm486_vm0, %v1521_v62, 0 }
 0x1c8   : > { %v1607_v4 = vpop.f32.mrf.mxu1  ;;  %915 = vmax.xlane.f32.xlu0 %v914_v3  ;;  %v1602_v5 = vpop.f32.mrf.mxu0  ;;  %v1519_v3 = vld [vmem:[%s2074_s4 + $0x8] sm:$0xf] }
 0x1c9   : > { %v1510_v6 = vclamps-f32 %v901_v2, 5.0 }
 0x1ca   : > { %v850_v7 = vpop.f32.mrf.mxu1  ;;  %v893_v8 = vpop.f32.mrf.mxu0 }
 0x1cb   : > { %v902_v9 = vmul.f32 0.17677669, %v893_v8  ;;  %v917_v10 = vsel %vm479_vm1, %v1510_v6, -inf  ;;  %v1248_v7 = vsel %vm486_vm0, %v1519_v3, 0 }
 0x1cc   : > { %918 = vmax.xlane.f32.xlu1 %v917_v10  ;;  %v1608_v11 = vpop.f32.mrf.mxu1  ;;  %v1613_v12 = vpop.f32.mrf.mxu0 }
 0x1cd   : > { %v1511_v13 = vclamps-f32 %v902_v9, 5.0 }
 0x1ce   : > { %v896_v14 = vpop.f32.mrf.mxu0 }
 0x1cf   : > { %v920_v15 = vsel %vm479_vm1, %v1511_v13, -inf }
 0x1d0   : > { %921 = vmax.xlane.f32.xlu1 %v920_v15  ;;  %v1614_v16 = vpop.f32.mrf.mxu0 }
 0x24d   : > { %v913_v17 = vpop.xlane.xlu0 %912 }
 0x24e   : > { %v923_v18 = vsub.f32 %v1508_v56, %v913_v17 }
 0x250   : > { %v927_v19 = vmul.f32 1.442695, %v923_v18 }
 0x251   : > { %v916_v20 = vpop.xlane.xlu0 %915 }
 0x252   : > { %1713 = vpow2.f32 %v927_v19  ;;  %v924_v21 = vsub.f32 %v1509_v63, %v916_v20 }
 0x254   : > { %v929_v22 = vmul.f32 1.442695, %v924_v21 }
 0x255   : > { %v919_v23 = vpop.xlane.xlu1 %918 }
 0x256   : > { %1715 = vpow2.f32 %v929_v22  ;;  %v925_v25 = vsub.f32 %v1510_v6, %v919_v23 }
 0x258   : > { %v931_v26 = vmul.f32 1.442695, %v925_v25 }
 0x259   : > { %v922_v27 = vpop.xlane.xlu1 %921 }
 0x25a   : > { %1717 = vpow2.f32 %v931_v26  ;;  %v926_v28 = vsub.f32 %v1511_v13, %v922_v27 }
 0x25c   : > { %v933_v29 = vmul.f32 1.442695, %v926_v28 }
 0x25e   : > { %1719 = vpow2.f32 %v933_v29 }
 0x25f   : > { %v1714_v30 = vpop.eup %1713 }
 0x260   : > { %v935_v31 = vsel %vm479_vm1, %v1714_v30, 0.0 }
 0x261   : > { %936 = vadd.xlane.f32.xlu0 %v935_v31 }
 0x263   : > { %v1716_v32 = vpop.eup %1715 }
 0x264   : > { %v938_v33 = vsel %vm479_vm1, %v1716_v32, 0.0 }
 0x265   : > { %939 = vadd.xlane.f32.xlu1 %v938_v33 }
 0x267   : > { %v1718_v34 = vpop.eup %1717 }
 0x268   : > { %v941_v35 = vsel %vm479_vm1, %v1718_v34, 0.0 }
 0x269   : > { %942 = vadd.xlane.f32.xlu0 %v941_v35 }
 0x26b   : > { %v1720_v36 = vpop.eup %1719 }
 0x26c   : > { %v944_v37 = vsel %vm479_vm1, %v1720_v36, 0.0 }
 0x26d   : > { %945 = vadd.xlane.f32.xlu1 %v944_v37 }
 0x2ea   : > { %v937_v38 = vpop.xlane.xlu0 %936 }
 0x2eb   : > { %1721 = vrcp.f32 %v937_v38 }
 0x2ee   : > { %v940_v39 = vpop.xlane.xlu1 %939 }
 0x2ef   : > { %1723 = vrcp.f32 %v940_v39 }
 0x2f2   : > { %v943_v40 = vpop.xlane.xlu0 %942 }
 0x2f3   : > { %1725 = vrcp.f32 %v943_v40 }
 0x2f6   : > { %v946_v41 = vpop.xlane.xlu1 %945 }
 0x2f7   : > { %1727 = vrcp.f32 %v946_v41 }
 0x2f8   : > { %v1722_v42 = vpop.eup %1721 }
 0x2f9   : > { %v951_v44 = vmul.f32 %v1722_v42, %v1714_v30 }
 0x2fb   : > { %v955_v46 = vpack.c.bf16 %v951_v44, %v951_v44 }
 0x2fc   : > { %v1724_v47 = vpop.eup %1723 }
 0x2fd   : > { %1618 = vmatmul.mubr.msk.bf16.vlgmr.msra.gmra.mxu1 %vm479_vm1, %v955_v46  ;;  %v952_v51 = vmul.f32 %v1724_v47, %v1716_v32 }
 0x2fe   : > { %1628 = vmatpush3.bf16.msra.mxu1 %v1055_v49  ;;  %1629 = vmatprep.mubr.msk.bf16.mxu1 %vm1792_vm2, %v1791_v24 }
 0x2ff   : > { %v956_v52 = vpack.c.bf16 %v952_v51, %v952_v51  ;;  %1639 = vmatprep.subr.bf16.mxu1 %v1791_v24 }
 0x300   : > { %v1726_v53 = vpop.eup %1725 }
 0x301   : > { %1624 = vmatmul.mubr.msk.bf16.vlgmr.msra.gmra.mxu0 %vm479_vm1, %v956_v52  ;;  %v953_v54 = vmul.f32 %v1726_v53, %v1718_v34  ;;  %v1523_v34 = vld [vmem:[%s2075_s5] ss:$0 sm:$0xff] }
 0x302   : > { %1634 = vmatpush3.bf16.msra.mxu0 %v1101_v45  ;;  %1635 = vmatprep.mubr.msk.bf16.mxu0 %vm1792_vm2, %v1791_v24 }
 0x303   : > { %v957_v48 = vpack.c.bf16 %v953_v54, %v953_v54  ;;  %1645 = vmatprep.subr.bf16.mxu0 %v1791_v24 }
 0x304   : > { %v1728_v55 = vpop.eup %1727 }
 0x305   : > { %1630 = vmatmul.mubr.msk.bf16.vlgmr.msra.gmra.mxu1 %vm479_vm1, %v957_v48  ;;  %v954_v56 = vmul.f32 %v1728_v55, %v1720_v36 }
 0x306   : > { %1641 = vmatprep.mubr.msk.bf16.mxu1 %vm1792_vm2, %v1791_v24  ;;  %1640 = vmatpush3.bf16.msra.mxu1 %v1154_v61 }
 0x307   : > { %v958_v57 = vpack.c.bf16 %v954_v56, %v954_v56  ;;  %1651 = vmatprep.subr.bf16.mxu1 %v1791_v24 }
 0x309   : > { %1636 = vmatmul.mubr.msk.bf16.vlgmr.msra.gmra.mxu0 %vm479_vm1, %v958_v57 }
 0x30a   : > { %1647 = vmatprep.mubr.msk.bf16.mxu0 %vm1792_vm2, %v1791_v24  ;;  %1646 = vmatpush3.bf16.msra.mxu0 %v1200_v59 }
 0x30b   : > { %1657 = vmatprep.subr.bf16.mxu0 %v1791_v24 }
 0x3bd   : > { %v999_v63 = vpop.f32.mrf.mxu1 }
 0x3be   : > { %v1143_v0 = vpack.c.bf16 %v999_v63, %v999_v63 }
 0x3bf   : > { %v1619_v2 = vpop.f32.mrf.mxu1 }
 0x3c0   : > { %1648 = vmatmul.mubr.msk.bf16.vlgmr.msra.gmra.mxu0 %vm479_vm1, %v1143_v0 }
 0x3c1   : > { %v1002_v4 = vpop.f32.mrf.mxu1  ;;  %v1045_v5 = vpop.f32.mrf.mxu0  ;;  %1658 = vmatpush3.bf16.msra.mxu0 %v1297_v1  ;;  %1659 = vmatprep.mubr.msk.bf16.mxu0 %vm1792_vm2, %v1791_v24 }
 0x3c2   : > { %v1144_v6 = vpack.c.bf16 %v1045_v5, %v1045_v5 }
 0x3c3   : > { %v1620_v8 = vpop.f32.mrf.mxu1  ;;  %v1625_v9 = vpop.f32.mrf.mxu0 }
 0x3c4   : > { %1642 = vmatmul.mubr.msk.bf16.vlgmr.msra.gmra.mxu1 %vm479_vm1, %v1144_v6 }
 0x3c5   : > { %v1048_v10 = vpop.f32.mrf.mxu0  ;;  %v1091_v11 = vpop.f32.mrf.mxu1  ;;  %1652 = vmatpush3.bf16.msra.mxu1 %v1248_v7  ;;  %1653 = vmatprep.mubr.msk.bf16.mxu1 %vm1792_vm2, %v1791_v24 }
 0x3c6   : > { %v1145_v16 = vpack.c.bf16 %v1091_v11, %v1091_v11 }
 0x3c7   : > { %v1626_v12 = vpop.f32.mrf.mxu0  ;;  %v1631_v13 = vpop.f32.mrf.mxu1 }
 0x3c9   : > { %v1094_v14 = vpop.f32.mrf.mxu1  ;;  %v1137_v15 = vpop.f32.mrf.mxu0 }
 0x3ca   : > { %v1146_v17 = vpack.c.bf16 %v1137_v15, %v1137_v15 }
 0x3cb   : > { %v1632_v18 = vpop.f32.mrf.mxu1  ;;  %v1637_v19 = vpop.f32.mrf.mxu0 }
 0x3cc   : > { %1654 = vmatmul.mubr.msk.bf16.vlgmr.msra.gmra.mxu1 %vm479_vm1, %v1145_v16  ;;  %1660 = vmatmul.mubr.msk.bf16.vlgmr.msra.gmra.mxu0 %vm479_vm1, %v1146_v17 }
 0x3cd   : > { %v1140_v20 = vpop.f32.mrf.mxu0 }
 0x3cf   : > { %v1638_v21 = vpop.f32.mrf.mxu0 }
 0x480   : > { %v1236_v22 = vpop.f32.mrf.mxu0 }
 0x482   : > { %v1649_v23 = vpop.f32.mrf.mxu0 }
 0x484   : > { %v1190_v25 = vpop.f32.mrf.mxu1  ;;  %v1239_v24 = vpop.f32.mrf.mxu0 }
 0x485   : > { %v1237_v30 = vadd.f32 %v1236_v22, %v1190_v25 }
 0x486   : > { %v1643_v26 = vpop.f32.mrf.mxu1  ;;  %v1650_v27 = vpop.f32.mrf.mxu0 }
 0x488   : > { %v1193_v28 = vpop.f32.mrf.mxu1 }
 0x48a   : > { %v1644_v29 = vpop.f32.mrf.mxu1 }
 0x48c   : > { %v1284_v31 = vpop.f32.mrf.mxu1  ;;  %v1333_v32 = vpop.f32.mrf.mxu0 }
 0x48d   : > { %v1290_v33 = vadd.f32 %v1284_v31, %v1237_v30 }
 0x48e   : > { %v1655_v35 = vpop.f32.mrf.mxu1  ;;  %v1661_v36 = vpop.f32.mrf.mxu0 }
 0x48f   : > { %v1339_v37 = vadd.f32 %v1333_v32, %v1290_v33 }
 0x490   : > { %v1287_v38 = vpop.f32.mrf.mxu1  ;;  %v1336_v39 = vpop.f32.mrf.mxu0 }
 0x491   : > { %v1347_v40 = vadd.f32 %v1523_v34, %v1339_v37 }
 0x492   : > { %v1656_v41 = vpop.f32.mrf.mxu1  ;;  %v1662_v42 = vpop.f32.mrf.mxu0 }
 0x493   : > { %1348 = vst [vmem:[%s454_s11] sm:$0xff] %v1347_v40 }
 0x494   : > { %1742 = shalt.err (!%p1739_p5)
}
 0x495   : > { %s1743_s19 = scalar_lea.hbm %s2027_s15, 128  ;;  %s1747_s28 = scalar_lea.hbm %s2076_s6, 256 }
 0x496   : > { %p1744_p7 = scmp.ne.s32.totalorder %s2027_s15, %s1743_s19  ;;  %p1748_p12 = scmp.lt.s32.totalorder %s2027_s15, %s2076_s6 }
 0x497   : > { %p1749_p13 = scmp.lt.s32.totalorder %s1747_s28, %s1743_s19 }
 0x498   : > { %p1745_p10 = pnand %p1744_p7, %p1871_p6 }
 0x499   : > { %p1750_p0 = por %p1749_p13, %p1748_p12 }
 0x49a   : > { %p1746_p11 = pneg %p1745_p10 }
 0x49c   : > { %p1751_p1 = pnand %p1750_p0, %p1746_p11 }
 0x49e   : > { %1754 = shalt.err (!%p1751_p1)
}
 0x49f   : > { %1666 = dma.vmem_to_hbm [thread:$0]  (%p1871_p6), %s2029_s12, 128, %s2027_s15, %s1350_s25  }
 0x4a0 PF: > { %s1375_s11 = sand.u32 1, %s1777_s21   ;;  %p1669_p2 = pnand %p1466_p9, %p1875_p8 }
 0x4a1   : > { %s1376_s13 = scalar_lea.sflag [#allocation6], %s1375_s11 }
 0x4a2   : > { %p1670_p3 = pneg %p1669_p2 }
 0x4a4   : > { %1772 = dma.done.wait (%p1670_p3), %s1376_s13, 128  }
 0x4a5   : > { %1774 = vsyncadd (%p1670_p3), %s1376_s13, 4294967168  ;;  %p16_p4 = scmp.ge.s32.totalorder %s1852_s27, 4   ;;  %s2080_s21 = smov %s1781_s22 }
 0x4a6   : > { %s2081_s22 = smov %s1785_s23  ;;  %s2082_s23 = smov %s1865_s30 }
 0x4a7   : > { %s2083_s24 = smov %s1852_s27  ;;  %18 = sbr.rel (!%p16_p4) target bundleno = 3 (0x3), region = 228 }
 0x4ac   :  { %1381 = vsyncpa [#allocation6], 1 }
 0x4ad   :  { %1383 = vsyncpa [#allocation6 + $0x1], 1 }

</bundles_post_ra>
